<compile_context>
chip_gen: v6e
topology: v6e:2x2x1
jax: 0.10.0
libtpu: 0.0.40
codegen_flags: <defaults>
</compile_context>

<pallas_src>
import functools
import math

import jax
import jax.numpy as jnp
from jax.experimental import pallas as pl
from jax.experimental.pallas import tpu as pltpu


# ----------------------------------------------------------------------------
# Kernel 1: LayerNorm (pre-norm), PyTorch-reference semantics
# ----------------------------------------------------------------------------
def _layernorm_kernel(x_ref, a_ref, b_ref, o_ref, *, eps):
    # x_ref: (TN, D); a_ref/b_ref: (1, D); o_ref: (TN, D)
    x = x_ref[...].astype(jnp.float32)
    d = x.shape[-1]
    mean = jnp.mean(x, axis=-1, keepdims=True)
    centered = x - mean
    # torch.Tensor.std() defaults to the unbiased (N-1) estimator.
    var = jnp.sum(centered * centered, axis=-1, keepdims=True) / (d - 1)
    std = jnp.sqrt(var)
    y = a_ref[...] * centered / (std + eps) + b_ref[...]
    o_ref[...] = y.astype(o_ref.dtype)


def _layer_norm(x2d, a_2, b_2, *, eps, row_tile):
    n, d = x2d.shape
    return pl.pallas_call(
        functools.partial(_layernorm_kernel, eps=eps),
        out_shape=jax.ShapeDtypeStruct((n, d), x2d.dtype),
        grid_spec=pltpu.PrefetchScalarGridSpec(
            num_scalar_prefetch=0,
            grid=(n // row_tile,),
            in_specs=[
                pl.BlockSpec((row_tile, d), lambda i: (i, 0)),
                pl.BlockSpec((1, d), lambda i: (0, 0)),
                pl.BlockSpec((1, d), lambda i: (0, 0)),
            ],
            out_specs=pl.BlockSpec((row_tile, d), lambda i: (i, 0)),
        ),
        compiler_params=pltpu.CompilerParams(
            dimension_semantics=("parallel",),
        ),
    )(x2d, a_2.reshape(1, d), b_2.reshape(1, d))


# ----------------------------------------------------------------------------
# Kernel 2: fused dropout + residual add
# ----------------------------------------------------------------------------
def _residual_dropout_kernel(seed_ref, x_ref, y_ref, o_ref, *, p):
    # seed_ref: SMEM scalar (scalar prefetch); x_ref/y_ref/o_ref: (TN, D)
    x = x_ref[...].astype(jnp.float32)
    y = y_ref[...].astype(jnp.float32)
    if p > 0.0:  # static Python branch — compiled away when p == 0.0
        pltpu.prng_seed(seed_ref[0] + pl.program_id(0))
        bits = pltpu.bitcast(pltpu.prng_random_bits(y.shape), jnp.uint32)
        thresh = jnp.uint32(int(p * (2.0 ** 32)))
        keep = (bits >= thresh).astype(jnp.float32)
        y = y * keep * (1.0 / (1.0 - p))
    o_ref[...] = (x + y).astype(o_ref.dtype)


def _residual_dropout(x2d, y2d, *, p, seed, row_tile):
    n, d = x2d.shape
    seed_arr = jnp.array([seed], dtype=jnp.int32)
    return pl.pallas_call(
        functools.partial(_residual_dropout_kernel, p=p),
        out_shape=jax.ShapeDtypeStruct((n, d), x2d.dtype),
        grid_spec=pltpu.PrefetchScalarGridSpec(
            num_scalar_prefetch=1,
            grid=(n // row_tile,),
            in_specs=[
                pl.BlockSpec((row_tile, d), lambda i, seed: (i, 0)),
                pl.BlockSpec((row_tile, d), lambda i, seed: (i, 0)),
            ],
            out_specs=pl.BlockSpec((row_tile, d), lambda i, seed: (i, 0)),
        ),
        compiler_params=pltpu.CompilerParams(
            dimension_semantics=("parallel",),
        ),
    )(seed_arr, x2d, y2d)


# ----------------------------------------------------------------------------
# SublayerConnection forward
# ----------------------------------------------------------------------------
def sublayer_connection_forward(x, sublayer, a_2, b_2, *,
                                dropout_p=0.0, eps=1e-6, seed=0,
                                row_tile=None):
    """x: (..., D) float32; sublayer: arbitrary JAX callable (..., D)->(..., D)."""
    orig_shape = x.shape
    d = orig_shape[-1]
    n = 1
    for s in orig_shape[:-1]:
        n *= s
    x2d = x.reshape(n, d)

    if row_tile is None:
        # Largest tile up to 256 rows that divides N (f32 sublane multiple of 8,
        # or the full row extent for small N).
        row_tile = min(n, 256)
        while n % row_tile != 0:
            row_tile //= 2
    assert n % row_tile == 0

    normed = _layer_norm(x2d, a_2, b_2, eps=eps, row_tile=row_tile)
    # The sublayer is an arbitrary user callable — applied outside the kernels,
    # exactly as the PyTorch module takes `sublayer` as a forward argument.
    y = sublayer(normed.reshape(orig_shape)).reshape(n, d)
    out = _residual_dropout(x2d, y, p=dropout_p, seed=seed, row_tile=row_tile)
    return out.reshape(orig_shape)


# ----------------------------------------------------------------------------
# Test
# ----------------------------------------------------------------------------
if __name__ == "__main__":
    # Small shapes: batch=2, seq=8, hidden=128 (lane-dense feature dim).
    B, S, D = 2, 8, 128
    eps = 1e-6
    dropout_p = 0.0  # eval-mode dropout => identity (deterministic reference)

    key = jax.random.PRNGKey(0)
    k_x, k_w, k_bw = jax.random.split(key, 3)

    x = jax.random.normal(k_x, (B, S, D), dtype=jnp.float32)
    # LayerNorm params: a_2 = ones, b_2 = zeros (PyTorch init).
    a_2 = jnp.ones((D,), dtype=jnp.float32)
    b_2 = jnp.zeros((D,), dtype=jnp.float32)
    # Example sublayer: a simple Linear(D, D) as a plain JAX callable.
    W = jax.random.normal(k_w, (D, D), dtype=jnp.float32) * (1.0 / math.sqrt(D))
    bw = jax.random.normal(k_bw, (D,), dtype=jnp.float32) * 0.1
    sublayer = lambda t: jnp.dot(t, W) + bw

    out = sublayer_connection_forward(x, sublayer, a_2, b_2,
                                      dropout_p=dropout_p, eps=eps)
    out = jax.block_until_ready(out)

    # Pure-JAX reference of the PyTorch forward (dropout_p = 0 => identity).
    mean = jnp.mean(x, axis=-1, keepdims=True)
    std = jnp.std(x, axis=-1, keepdims=True, ddof=1)  # unbiased, like torch
    normed_ref = a_2 * (x - mean) / (std + eps) + b_2
    ref = x + sublayer(normed_ref)

    assert out.shape == (B, S, D)
    assert jnp.allclose(out, ref, atol=1e-4, rtol=1e-4), (
        float(jnp.max(jnp.abs(out - ref))))

    print("KERNEL_OK")
</pallas_src>

<mosaic_0001>
module attributes {stable_mosaic.version = 11 : i64} {
  func.func @_layernorm_kernel(%arg0: i32, %arg1: memref<16x128xf32, #tpu.memory_space<vmem>>, %arg2: memref<1x128xf32, #tpu.memory_space<vmem>>, %arg3: memref<1x128xf32, #tpu.memory_space<vmem>>, %arg4: memref<16x128xf32, #tpu.memory_space<vmem>>) attributes {dimension_semantics = [#tpu.dimension_semantics<parallel>], iteration_bounds = array<i64: 1>, scalar_prefetch = 0 : i64, scratch_operands = 0 : i64, tpu.core_type = #tpu.core_type<tc>, window_params = [{transform_indices = @transform_0, window_bounds = array<i64: 16, 128>}, {pipeline_mode = #tpu.pipeline_mode<synchronous>, transform_indices = @transform_1, window_bounds = array<i64: 1, 128>}, {pipeline_mode = #tpu.pipeline_mode<synchronous>, transform_indices = @transform_2, window_bounds = array<i64: 1, 128>}, {transform_indices = @transform_3, window_bounds = array<i64: 16, 128>}]} {
    %c0 = arith.constant 0 : index
    %c0_0 = arith.constant 0 : index
    %0 = vector.load %arg1[%c0, %c0_0] : memref<16x128xf32, #tpu.memory_space<vmem>>, vector<16x128xf32>
    %cst = arith.constant dense<0.000000e+00> : vector<16xf32>
    %1 = vector.multi_reduction <add>, %0, %cst [1] : vector<16x128xf32> to vector<16xf32>
    %2 = vector.shape_cast %1 : vector<16xf32> to vector<16x1xf32>
    %cst_1 = arith.constant 1.280000e+02 : f32
    %3 = vector.broadcast %cst_1 : f32 to vector<16x1xf32>
    %4 = arith.divf %2, %3 : vector<16x1xf32>
    %5 = vector.broadcast %4 : vector<16x1xf32> to vector<16x128xf32>
    %6 = arith.subf %0, %5 : vector<16x128xf32>
    %7 = arith.mulf %6, %6 : vector<16x128xf32>
    %cst_2 = arith.constant dense<0.000000e+00> : vector<16xf32>
    %8 = vector.multi_reduction <add>, %7, %cst_2 [1] : vector<16x128xf32> to vector<16xf32>
    %9 = vector.shape_cast %8 : vector<16xf32> to vector<16x1xf32>
    %cst_3 = arith.constant 1.270000e+02 : f32
    %10 = vector.broadcast %cst_3 : f32 to vector<16x1xf32>
    %11 = arith.divf %9, %10 : vector<16x1xf32>
    %12 = math.sqrt %11 : vector<16x1xf32>
    %c0_4 = arith.constant 0 : index
    %c0_5 = arith.constant 0 : index
    %13 = vector.load %arg2[%c0_4, %c0_5] : memref<1x128xf32, #tpu.memory_space<vmem>>, vector<1x128xf32>
    %14 = vector.broadcast %13 : vector<1x128xf32> to vector<16x128xf32>
    %15 = arith.mulf %14, %6 : vector<16x128xf32>
    %cst_6 = arith.constant 9.99999997E-7 : f32
    %16 = vector.broadcast %cst_6 : f32 to vector<16x1xf32>
    %17 = arith.addf %12, %16 : vector<16x1xf32>
    %18 = vector.broadcast %17 : vector<16x1xf32> to vector<16x128xf32>
    %19 = arith.divf %15, %18 : vector<16x128xf32>
    %c0_7 = arith.constant 0 : index
    %c0_8 = arith.constant 0 : index
    %20 = vector.load %arg3[%c0_7, %c0_8] : memref<1x128xf32, #tpu.memory_space<vmem>>, vector<1x128xf32>
    %21 = vector.broadcast %20 : vector<1x128xf32> to vector<16x128xf32>
    %22 = arith.addf %19, %21 : vector<16x128xf32>
    %c0_9 = arith.constant 0 : index
    %c0_10 = arith.constant 0 : index
    %23 = vector.load %arg4[%c0_9, %c0_10] : memref<16x128xf32, #tpu.memory_space<vmem>>, vector<16x128xf32>
    tpu.vector_store %arg4[%c0_9, %c0_10], %22 {strides = array<i32>} : memref<16x128xf32, #tpu.memory_space<vmem>>, vector<16x128xf32>,
    return
  }
  func.func @transform_0(%arg0: i32) -> (i32, i32) {
    %c0_i32 = arith.constant 0 : i32
    %c0_i32_0 = arith.constant 0 : i32
    return %arg0, %c0_i32 : i32, i32
  }
  func.func @transform_1(%arg0: i32) -> (i32, i32) {
    %c0_i32 = arith.constant 0 : i32
    %c0_i32_0 = arith.constant 0 : i32
    %c0_i32_1 = arith.constant 0 : i32
    return %c0_i32, %c0_i32_0 : i32, i32
  }
  func.func @transform_2(%arg0: i32) -> (i32, i32) {
    %c0_i32 = arith.constant 0 : i32
    %c0_i32_0 = arith.constant 0 : i32
    %c0_i32_1 = arith.constant 0 : i32
    return %c0_i32, %c0_i32_0 : i32, i32
  }
  func.func @transform_3(%arg0: i32) -> (i32, i32) {
    %c0_i32 = arith.constant 0 : i32
    %c0_i32_0 = arith.constant 0 : i32
    return %arg0, %c0_i32 : i32, i32
  }
}

</mosaic_0001>

<bundles_post_ra>
// kernel: tpu_custom_call.1
= control target key start
LH: loop header
LB: loop body
LE: loop exit
PB: predicated region body
PF: predicated region fallthrough
CT: control target
= control target key end

     0   :  { %8 = vsyncpa [#allocation3], 0  ;;  %s206_s0 = inlined_call_operand.hbm [shape: f32[16,128], index: 0, kind: input, shape index: {}]   ;;  %s207_s1 = inlined_call_operand.vmem [shape: f32[1,128], index: 1, kind: input, shape index: {}]   ;;  %s208_s2 = inlined_call_operand.vmem [shape: f32[1,128], index: 2, kind: input, shape index: {}]   ;;  %s209_s3 = inlined_call_operand.hbm [shape: f32[16,128], index: 3, kind: output, shape index: {}]  }
   0x1   :  { %9 = vsyncpa [#allocation4], 0  ;;  %s164_s12 = smov [#allocation2]  }
   0x2   :  { %s15_s13 = sshll.u32 %s164_s12, 4  ;;  %s16_s13 = int_to_ptr.vmem [resolvable:$true] %s15_s13 }
   0x3   :  { %s128_s14 = scalar_lea.vmem %s16_s13, 256  ;;  %p133_p1 = scmp.lt.s32.totalorder %s16_s13, %s16_s13 }
   0x4   :  { %p129_p0 = scmp.ne.s32.totalorder %s16_s13, %s128_s14  ;;  %p134_p2 = scmp.lt.s32.totalorder %s128_s14, %s128_s14 }
   0x6   :  { %p135_p3 = por %p134_p2, %p133_p1 }
   0x8   :  { %p136_p4 = pnand %p135_p3, %p129_p0 }
   0xa   :  { %139 = shalt.err (!%p136_p4)
}
   0xb   :  { %s165_s15 = smov 128   ;;  %s166_s16 = smov 8  }
   0xc   :  { %21 = dma.hbm_to_vmem [thread:$0]  %s206_s0, 256, %s16_s13, [#allocation3], %s165_s15, %s165_s15, %s166_s16  }
   0xd   :  { %160 = dma.done.wait [#allocation3], 256  }
   0xe   :  { %161 = vsyncadd [#allocation3], 4294967040  ;;  %v29_v0 = vld [vmem:[#allocation2] sm:$0xff]  ;;  %v30_v1 = vld [vmem:[#allocation2 + $0x8] sm:$0xff]  ;;  %s167_s22 = smov [#allocation5]  }
   0xf   :  { %31 = vadd.xlane.f32.xlu0 %v29_v0  ;;  %v106_v26 = vld [vmem:[%s207_s1] ss:$0 sm:$0xff]  ;;  %s94_s23 = sshll.u32 %s167_s22, 4  ;;  %s95_s23 = int_to_ptr.vmem [resolvable:$true] %s94_s23 }
  0x10   :  { %v107_v29 = vld [vmem:[%s208_s2] ss:$0 sm:$0xff]  ;;  %s140_s24 = scalar_lea.vmem %s95_s23, 256  ;;  %p145_p6 = scmp.lt.s32.totalorder %s95_s23, %s95_s23 }
  0x11   :  { %p141_p5 = scmp.ne.s32.totalorder %s95_s23, %s140_s24  ;;  %p146_p7 = scmp.lt.s32.totalorder %s140_s24, %s140_s24 }
  0x13   :  { %33 = vadd.xlane.f32.xlu0 %v30_v1  ;;  %p147_p8 = por %p146_p7, %p145_p6 }
  0x15   :  { %p148_p9 = pnand %p147_p8, %p141_p5 }
  0x98   :  { %v32_v2 = vpop.xlane.xlu0 %31 }
  0x99   :  { %v36_v3 = vmul.f32 0.0078125, %v32_v2 }
  0x9b   :  { %v38_v4 = vsub.f32 %v29_v0, %v36_v3 }
  0x9c   :  { %v34_v5 = vpop.xlane.xlu0 %33 }
  0x9d   :  { %v37_v6 = vmul.f32 0.0078125, %v34_v5  ;;  %v40_v7 = vmul.f32 %v38_v4, %v38_v4  ;;  %v70_v27 = vmul.f32 %v106_v26, %v38_v4 }
  0x9f   :  { %v39_v8 = vsub.f32 %v30_v1, %v37_v6  ;;  %42 = vadd.xlane.f32.xlu1 %v40_v7 }
  0xa1   :  { %v41_v9 = vmul.f32 %v39_v8, %v39_v8  ;;  %v71_v31 = vmul.f32 %v106_v26, %v39_v8 }
  0xa3   :  { %44 = vadd.xlane.f32.xlu1 %v41_v9 }
 0x128   :  { %v43_v10 = vpop.xlane.xlu1 %42 }
 0x129   :  { %v47_v11 = vmul.f32 0.007874016, %v43_v10 }
 0x12b   :  { %112 = vrsqrt.f32 %v47_v11  ;;  %vm51_vm0 = vcmp.eq.f32.partialorder %v47_v11, inf  ;;  %v54_v16 = vand.u32 2147483648, %v47_v11  ;;  %vm53_vm1 = vcmp.eq.f32.partialorder %v47_v11, 0.0 }
 0x12c   :  { %v45_v12 = vpop.xlane.xlu1 %44 }
 0x12d   :  { %v48_v13 = vmul.f32 0.007874016, %v45_v12 }
 0x12f   :  { %114 = vrsqrt.f32 %v48_v13  ;;  %vm58_vm2 = vcmp.eq.f32.partialorder %v48_v13, inf  ;;  %v61_v22 = vand.u32 2147483648, %v48_v13  ;;  %vm60_vm3 = vcmp.eq.f32.partialorder %v48_v13, 0.0 }
 0x138   :  { %v113_v14 = vpop.eup %112 }
 0x139   :  { %v50_v15 = vmul.f32 %v113_v14, %v47_v11 }
 0x13b   :  { %v52_v17 = vsel %vm51_vm0, %v47_v11, %v50_v15 }
 0x13c   :  { %v115_v18 = vpop.eup %114  ;;  %v55_v19 = vsel %vm53_vm1, %v54_v16, %v52_v17 }
 0x13d   :  { %v72_v20 = vadd.f32 1e-06, %v55_v19  ;;  %v57_v21 = vmul.f32 %v115_v18, %v48_v13 }
 0x13f   :  { %v59_v23 = vsel %vm58_vm2, %v48_v13, %v57_v21  ;;  %116 = vrcp.f32 %v72_v20 }
 0x140   :  { %v62_v24 = vsel %vm60_vm3, %v61_v22, %v59_v23 }
 0x141   :  { %v73_v25 = vadd.f32 1e-06, %v62_v24 }
 0x143   :  { %118 = vrcp.f32 %v73_v25 }
 0x14c   :  { %v117_v28 = vpop.eup %116 }
 0x14d   :  { %v75_v30 = vmul.f32 %v117_v28, %v70_v27 }
 0x14f   :  { %v85_v32 = vadd.f32 %v107_v29, %v75_v30 }
 0x150   :  { %v119_v33 = vpop.eup %118 }
 0x151   :  { %v77_v34 = vmul.f32 %v119_v33, %v71_v31  ;;  %87 = vst [vmem:[#allocation5] sm:$0xff] %v85_v32 }
 0x153   :  { %v86_v35 = vadd.f32 %v107_v29, %v77_v34 }
 0x155   :  { %88 = vst [vmem:[#allocation5 + $0x8] sm:$0xff] %v86_v35 }
 0x156   :  { %151 = shalt.err (!%p148_p9)
}
 0x157   :  { %100 = dma.vmem_to_hbm [thread:$0]  %s95_s23, 256, %s209_s3, [#allocation4], %s165_s15, %s165_s15, %s166_s16  }
 0x158   :  { %162 = dma.done.wait [#allocation4], 256  }
 0x159   :  { %163 = vsyncadd [#allocation4], 4294967040 }
 0x15a   :  { %104 = vsyncpa [#allocation3], 1 }
 0x15b   :  { %105 = vsyncpa [#allocation4], 1 }

</bundles_post_ra>
